<compile_context>
chip_gen: v6e
topology: v6e:2x2x1
jax: 0.10.0
libtpu: 0.0.40
codegen_flags: <defaults>
</compile_context>

<pallas_src>
import functools
import math

import jax
import jax.numpy as jnp
from jax import lax
from jax.experimental import pallas as pl
from jax.experimental.pallas import tpu as pltpu


def _round_up(x, m):
    return (x + m - 1) // m * m


def _stack_kernel(x_ref, w_ref, b_ref, o_ref, *, kernel_size, dilations):
    # x_ref: (1, Cp, Lp) one batch element (padded channels / length)
    # w_ref: (layers, Cp, K*Cp)  fused, lane-dense weights
    # b_ref: (layers, Cp, 1)     f32 bias as a sublane vector
    # o_ref: (1, Cp, Lp)
    x = x_ref[0]                       # (Cp, Lp), native dtype (no per-tap casts)
    C, L = x.shape
    cdt = x.dtype
    K = kernel_size

    # Hoisted lane-index iota for the causal masks (2-D iota; built once).
    col = lax.broadcasted_iota(jnp.int32, (C, L), 1)

    for l, d in enumerate(dilations):
        # Tap k holds x[c, t - (K-1-k)*d], zero where the tap index is negative.
        taps = []
        for k in range(K):
            shift = (K - 1 - k) * d
            if shift == 0:
                taps.append(x)
            elif shift >= L:               # whole tap out of range -> zeros
                taps.append(jnp.zeros((C, L), cdt))
            else:
                xk = pltpu.roll(x, shift=shift, axis=1)       # XLU lane rotate
                taps.append(jnp.where(col >= shift, xk, jnp.zeros_like(xk)))
        # Sublane-aligned stack (Cp multiple of 8): stays in vregs, no scratch.
        stk = jnp.concatenate(taps, axis=0)                    # (K*Cp, Lp)
        # One MXU pass per layer: (Cp, K*Cp) @ (K*Cp, Lp), f32 accumulation.
        y = jnp.dot(w_ref[l], stk, preferred_element_type=jnp.float32)
        y = y + b_ref[l]                   # (Cp, 1) broadcast over the lane axis
        x = y.astype(cdt)                  # feed next layer

    o_ref[0] = x.astype(o_ref.dtype)


def dilated_causal_conv_stack(x, w, b, kernel_size, layers):
    """x: (N, C, L); w: (layers, C_out, C_in, K); b: (layers, C_out)."""
    N, C_in, L = x.shape
    n_layers, C_out, C_in_w, K = w.shape
    assert K == kernel_size and n_layers == layers and C_in_w == C_in
    # The module's per-block shape assert requires in_channels == out_channels.
    assert C_in == C_out
    dilations = tuple(i ** 2 for i in range(1, layers + 1))

    # Pad channels to the sublane width (8) and length to the lane width (128)
    # so every kernel access is a full, aligned vreg tile and the output spec
    # is lane-dense.
    Cp = _round_up(C_in, 8)
    Lp = _round_up(L, 128)
    if Cp != C_in or Lp != L:
        x = jnp.pad(x, ((0, 0), (0, Cp - C_in), (0, Lp - L)))
    if Cp != C_in:
        w = jnp.pad(w, ((0, 0), (0, Cp - C_out), (0, Cp - C_in), (0, 0)))
        b = jnp.pad(b, ((0, 0), (0, Cp - C_out)))

    # Lane-dense fused weights: w_f[l, o, k*Cp + c] = w[l, o, c, k].
    w_f = jnp.transpose(w, (0, 1, 3, 2)).reshape(layers, Cp, K * Cp)
    w_f = w_f.astype(x.dtype)
    # Bias as a (Cp, 1) sublane vector per layer, kept in f32.
    b_f = b.reshape(layers, Cp, 1).astype(jnp.float32)

    kernel = functools.partial(_stack_kernel, kernel_size=K, dilations=dilations)

    itemsize = jnp.dtype(x.dtype).itemsize
    cost = pl.CostEstimate(
        flops=2 * N * Lp * Cp * Cp * K * layers,
        transcendentals=0,
        bytes_accessed=int(2 * x.size * itemsize
                           + w_f.size * itemsize
                           + b_f.size * 4),
    )

    out = pl.pallas_call(
        kernel,
        out_shape=jax.ShapeDtypeStruct((N, Cp, Lp), x.dtype),
        grid_spec=pltpu.PrefetchScalarGridSpec(
            num_scalar_prefetch=0,
            grid=(N,),
            in_specs=[
                pl.BlockSpec((1, Cp, Lp), lambda n: (n, 0, 0)),
                pl.BlockSpec((layers, Cp, K * Cp), lambda n: (0, 0, 0)),
                pl.BlockSpec((layers, Cp, 1), lambda n: (0, 0, 0)),
            ],
            out_specs=pl.BlockSpec((1, Cp, Lp), lambda n: (n, 0, 0)),
        ),
        compiler_params=pltpu.CompilerParams(
            dimension_semantics=("parallel",)),
        cost_estimate=cost,
    )(x, w_f, b_f)

    if Cp != C_out or Lp != L:
        out = out[:, :C_out, :L]
    return out


def _reference(x, w, b, kernel_size, layers):
    """Pure-JAX reference matching PyTorch Conv1d + causal slice."""
    L = x.shape[-1]
    y = x
    for l in range(layers):
        d = (l + 1) ** 2
        pad = (kernel_size - 1) * d
        out = lax.conv_general_dilated(
            y, w[l], window_strides=(1,), padding=[(pad, pad)],
            rhs_dilation=(d,), dimension_numbers=("NCH", "OIH", "NCH"))
        out = out + b[l][None, :, None]
        y = out[:, :, :L]   # == [:, :, :-pad]; also correct when pad == 0
    return y


if __name__ == "__main__":
    # Small shapes consistent with the module (in_channels == out_channels so
    # the per-block shape assert holds). L=120 exercises the lane padding path.
    N, C, L = 2, 8, 120
    K, LAYERS = 3, 3          # dilations: 1, 4, 9

    key = jax.random.PRNGKey(0)
    kx, kw, kb = jax.random.split(key, 3)
    x = jax.random.normal(kx, (N, C, L), dtype=jnp.float32)

    # Deterministic Conv1d-style init: U(-1/sqrt(C_in*K), 1/sqrt(C_in*K))
    bound = 1.0 / math.sqrt(C * K)
    w = jax.random.uniform(kw, (LAYERS, C, C, K), jnp.float32, -bound, bound)
    b = jax.random.uniform(kb, (LAYERS, C), jnp.float32, -bound, bound)

    out = dilated_causal_conv_stack(x, w, b, K, LAYERS)
    out = jax.block_until_ready(out)

    ref = _reference(x, w, b, K, LAYERS)
    assert out.shape == x.shape, "Shape mismatch"
    assert jnp.allclose(out, ref, atol=1e-3, rtol=1e-3), "Numerics mismatch"

    print("KERNEL_OK")
</pallas_src>

<mosaic_0001>
module attributes {stable_mosaic.version = 11 : i64} {
  func.func @_stack_kernel(%arg0: i32, %arg1: memref<1x8x128xf32, #tpu.memory_space<vmem>>, %arg2: memref<3x8x24xf32, #tpu.memory_space<vmem>>, %arg3: memref<3x8x1xf32, #tpu.memory_space<vmem>>, %arg4: memref<1x8x128xf32, #tpu.memory_space<vmem>>) attributes {dimension_semantics = [#tpu.dimension_semantics<parallel>], iteration_bounds = array<i64: 2>, scalar_prefetch = 0 : i64, scratch_operands = 0 : i64, tpu.core_type = #tpu.core_type<tc>, window_params = [{transform_indices = @transform_0, window_bounds = array<i64: 1, 8, 128>}, {pipeline_mode = #tpu.pipeline_mode<synchronous>, transform_indices = @transform_1, window_bounds = array<i64: 3, 8, 24>}, {pipeline_mode = #tpu.pipeline_mode<synchronous>, transform_indices = @transform_2, window_bounds = array<i64: 3, 8, 1>}, {transform_indices = @transform_3, window_bounds = array<i64: 1, 8, 128>}]} {
    %c0 = arith.constant 0 : index
    %c0_0 = arith.constant 0 : index
    %c0_1 = arith.constant 0 : index
    %0 = vector.load %arg1[%c0, %c0_0, %c0_1] : memref<1x8x128xf32, #tpu.memory_space<vmem>>, vector<1x8x128xf32>
    %1 = vector.shape_cast %0 : vector<1x8x128xf32> to vector<8x128xf32>
    %2 = tpu.iota {dimensions = array<i32: 1>} : vector<8x128xi32>
    %c2_i32 = arith.constant 2 : i32
    %3 = tpu.dynamic_rotate %1 by %c2_i32 dim 1 : vector<8x128xf32>, i32 -> vector<8x128xf32>
    %c2_i32_2 = arith.constant 2 : i32
    %4 = vector.broadcast %c2_i32_2 : i32 to vector<8x128xi32>
    %5 = arith.cmpi sge, %2, %4 : vector<8x128xi32>
    %cst = arith.constant 0.000000e+00 : f32
    %6 = vector.broadcast %cst : f32 to vector<8x128xf32>
    %7 = arith.select %5, %3, %6 : vector<8x128xi1>, vector<8x128xf32>
    %c1_i32 = arith.constant 1 : i32
    %8 = tpu.dynamic_rotate %1 by %c1_i32 dim 1 : vector<8x128xf32>, i32 -> vector<8x128xf32>
    %c1_i32_3 = arith.constant 1 : i32
    %9 = vector.broadcast %c1_i32_3 : i32 to vector<8x128xi32>
    %10 = arith.cmpi sge, %2, %9 : vector<8x128xi32>
    %cst_4 = arith.constant 0.000000e+00 : f32
    %11 = vector.broadcast %cst_4 : f32 to vector<8x128xf32>
    %12 = arith.select %10, %8, %11 : vector<8x128xi1>, vector<8x128xf32>
    %13 = tpu.concatenate %7, %12, %1 in 0 : vector<8x128xf32>, vector<8x128xf32>, vector<8x128xf32> -> vector<24x128xf32>
    %c0_5 = arith.constant 0 : index
    %c0_6 = arith.constant 0 : index
    %c0_7 = arith.constant 0 : index
    %14 = vector.load %arg2[%c0_5, %c0_6, %c0_7] : memref<3x8x24xf32, #tpu.memory_space<vmem>>, vector<1x8x24xf32>
    %15 = vector.shape_cast %14 : vector<1x8x24xf32> to vector<8x24xf32>
    %cst_8 = arith.constant dense<0.000000e+00> : vector<8x128xf32>
    %16 = tpu.matmul %15, %13, %cst_8 {dimension_numbers = #tpu.dot_dimension_numbers<[1], [0], [0], [1], [0, 0, 1, 1], [], []>} : vector<8x24xf32>, vector<24x128xf32>, vector<8x128xf32> -> vector<8x128xf32>
    %c0_9 = arith.constant 0 : index
    %c0_10 = arith.constant 0 : index
    %c0_11 = arith.constant 0 : index
    %17 = vector.load %arg3[%c0_9, %c0_10, %c0_11] : memref<3x8x1xf32, #tpu.memory_space<vmem>>, vector<1x8x1xf32>
    %18 = vector.shape_cast %17 : vector<1x8x1xf32> to vector<8x1xf32>
    %19 = vector.broadcast %18 : vector<8x1xf32> to vector<8x128xf32>
    %20 = arith.addf %16, %19 : vector<8x128xf32>
    %c8_i32 = arith.constant 8 : i32
    %21 = tpu.dynamic_rotate %20 by %c8_i32 dim 1 : vector<8x128xf32>, i32 -> vector<8x128xf32>
    %c8_i32_12 = arith.constant 8 : i32
    %22 = vector.broadcast %c8_i32_12 : i32 to vector<8x128xi32>
    %23 = arith.cmpi sge, %2, %22 : vector<8x128xi32>
    %cst_13 = arith.constant 0.000000e+00 : f32
    %24 = vector.broadcast %cst_13 : f32 to vector<8x128xf32>
    %25 = arith.select %23, %21, %24 : vector<8x128xi1>, vector<8x128xf32>
    %c4_i32 = arith.constant 4 : i32
    %26 = tpu.dynamic_rotate %20 by %c4_i32 dim 1 : vector<8x128xf32>, i32 -> vector<8x128xf32>
    %c4_i32_14 = arith.constant 4 : i32
    %27 = vector.broadcast %c4_i32_14 : i32 to vector<8x128xi32>
    %28 = arith.cmpi sge, %2, %27 : vector<8x128xi32>
    %cst_15 = arith.constant 0.000000e+00 : f32
    %29 = vector.broadcast %cst_15 : f32 to vector<8x128xf32>
    %30 = arith.select %28, %26, %29 : vector<8x128xi1>, vector<8x128xf32>
    %31 = tpu.concatenate %25, %30, %20 in 0 : vector<8x128xf32>, vector<8x128xf32>, vector<8x128xf32> -> vector<24x128xf32>
    %c1 = arith.constant 1 : index
    %c0_16 = arith.constant 0 : index
    %c0_17 = arith.constant 0 : index
    %32 = vector.load %arg2[%c1, %c0_16, %c0_17] : memref<3x8x24xf32, #tpu.memory_space<vmem>>, vector<1x8x24xf32>
    %33 = vector.shape_cast %32 : vector<1x8x24xf32> to vector<8x24xf32>
    %cst_18 = arith.constant dense<0.000000e+00> : vector<8x128xf32>
    %34 = tpu.matmul %33, %31, %cst_18 {dimension_numbers = #tpu.dot_dimension_numbers<[1], [0], [0], [1], [0, 0, 1, 1], [], []>} : vector<8x24xf32>, vector<24x128xf32>, vector<8x128xf32> -> vector<8x128xf32>
    %c1_19 = arith.constant 1 : index
    %c0_20 = arith.constant 0 : index
    %c0_21 = arith.constant 0 : index
    %35 = vector.load %arg3[%c1_19, %c0_20, %c0_21] : memref<3x8x1xf32, #tpu.memory_space<vmem>>, vector<1x8x1xf32>
    %36 = vector.shape_cast %35 : vector<1x8x1xf32> to vector<8x1xf32>
    %37 = vector.broadcast %36 : vector<8x1xf32> to vector<8x128xf32>
    %38 = arith.addf %34, %37 : vector<8x128xf32>
    %c18_i32 = arith.constant 18 : i32
    %39 = tpu.dynamic_rotate %38 by %c18_i32 dim 1 : vector<8x128xf32>, i32 -> vector<8x128xf32>
    %c18_i32_22 = arith.constant 18 : i32
    %40 = vector.broadcast %c18_i32_22 : i32 to vector<8x128xi32>
    %41 = arith.cmpi sge, %2, %40 : vector<8x128xi32>
    %cst_23 = arith.constant 0.000000e+00 : f32
    %42 = vector.broadcast %cst_23 : f32 to vector<8x128xf32>
    %43 = arith.select %41, %39, %42 : vector<8x128xi1>, vector<8x128xf32>
    %c9_i32 = arith.constant 9 : i32
    %44 = tpu.dynamic_rotate %38 by %c9_i32 dim 1 : vector<8x128xf32>, i32 -> vector<8x128xf32>
    %c9_i32_24 = arith.constant 9 : i32
    %45 = vector.broadcast %c9_i32_24 : i32 to vector<8x128xi32>
    %46 = arith.cmpi sge, %2, %45 : vector<8x128xi32>
    %cst_25 = arith.constant 0.000000e+00 : f32
    %47 = vector.broadcast %cst_25 : f32 to vector<8x128xf32>
    %48 = arith.select %46, %44, %47 : vector<8x128xi1>, vector<8x128xf32>
    %49 = tpu.concatenate %43, %48, %38 in 0 : vector<8x128xf32>, vector<8x128xf32>, vector<8x128xf32> -> vector<24x128xf32>
    %c2 = arith.constant 2 : index
    %c0_26 = arith.constant 0 : index
    %c0_27 = arith.constant 0 : index
    %50 = vector.load %arg2[%c2, %c0_26, %c0_27] : memref<3x8x24xf32, #tpu.memory_space<vmem>>, vector<1x8x24xf32>
    %51 = vector.shape_cast %50 : vector<1x8x24xf32> to vector<8x24xf32>
    %cst_28 = arith.constant dense<0.000000e+00> : vector<8x128xf32>
    %52 = tpu.matmul %51, %49, %cst_28 {dimension_numbers = #tpu.dot_dimension_numbers<[1], [0], [0], [1], [0, 0, 1, 1], [], []>} : vector<8x24xf32>, vector<24x128xf32>, vector<8x128xf32> -> vector<8x128xf32>
    %c2_29 = arith.constant 2 : index
    %c0_30 = arith.constant 0 : index
    %c0_31 = arith.constant 0 : index
    %53 = vector.load %arg3[%c2_29, %c0_30, %c0_31] : memref<3x8x1xf32, #tpu.memory_space<vmem>>, vector<1x8x1xf32>
    %54 = vector.shape_cast %53 : vector<1x8x1xf32> to vector<8x1xf32>
    %55 = vector.broadcast %54 : vector<8x1xf32> to vector<8x128xf32>
    %56 = arith.addf %52, %55 : vector<8x128xf32>
    %c0_32 = arith.constant 0 : index
    %c0_33 = arith.constant 0 : index
    %c0_34 = arith.constant 0 : index
    %57 = vector.load %arg4[%c0_32, %c0_33, %c0_34] : memref<1x8x128xf32, #tpu.memory_space<vmem>>, vector<1x8x128xf32>
    %58 = vector.shape_cast %57 : vector<1x8x128xf32> to vector<8x128xf32>
    %59 = vector.shape_cast %56 : vector<8x128xf32> to vector<1x8x128xf32>
    tpu.vector_store %arg4[%c0_32, %c0_33, %c0_34], %59 {strides = array<i32>} : memref<1x8x128xf32, #tpu.memory_space<vmem>>, vector<1x8x128xf32>,
    return
  }
  func.func @transform_0(%arg0: i32) -> (i32, i32, i32) {
    %c0_i32 = arith.constant 0 : i32
    %c0_i32_0 = arith.constant 0 : i32
    %c0_i32_1 = arith.constant 0 : i32
    return %arg0, %c0_i32, %c0_i32_0 : i32, i32, i32
  }
  func.func @transform_1(%arg0: i32) -> (i32, i32, i32) {
    %c0_i32 = arith.constant 0 : i32
    %c0_i32_0 = arith.constant 0 : i32
    %c0_i32_1 = arith.constant 0 : i32
    %c0_i32_2 = arith.constant 0 : i32
    return %c0_i32, %c0_i32_0, %c0_i32_1 : i32, i32, i32
  }
  func.func @transform_2(%arg0: i32) -> (i32, i32, i32) {
    %c0_i32 = arith.constant 0 : i32
    %c0_i32_0 = arith.constant 0 : i32
    %c0_i32_1 = arith.constant 0 : i32
    %c0_i32_2 = arith.constant 0 : i32
    return %c0_i32, %c0_i32_0, %c0_i32_1 : i32, i32, i32
  }
  func.func @transform_3(%arg0: i32) -> (i32, i32, i32) {
    %c0_i32 = arith.constant 0 : i32
    %c0_i32_0 = arith.constant 0 : i32
    %c0_i32_1 = arith.constant 0 : i32
    return %arg0, %c0_i32, %c0_i32_0 : i32, i32, i32
  }
}

</mosaic_0001>

<bundles_post_ra>
// kernel: tpu_custom_call.1
= control target key start
LH: loop header
LB: loop body
LE: loop exit
PB: predicated region body
PF: predicated region fallthrough
CT: control target
= control target key end

     0   :  { %8 = vsyncpa [#allocation3], 0  ;;  %s976_s0 = inlined_call_operand.hbm [shape: f32[2,8,128], index: 0, kind: input, shape index: {}]   ;;  %s977_s1 = inlined_call_operand.vmem [shape: f32[3,8,24], index: 1, kind: input, shape index: {}]   ;;  %s978_s2 = inlined_call_operand.vmem [shape: f32[3,8,1], index: 2, kind: input, shape index: {}]   ;;  %s979_s3 = inlined_call_operand.hbm [shape: f32[2,8,128], index: 3, kind: output, shape index: {}]  }
   0x1   :  { %10 = vsyncpa [#allocation3 + $0x1], 0 }
   0x2   :  { %11 = vsyncpa [#allocation4], 0 }
   0x3   :  { %13 = vsyncpa [#allocation4 + $0x1], 0  ;;  %s789_s12 = smov 0   ;;  %s791_s13 = smov 0  }
   0x4   :  { %s793_s14 = smov 0   ;;  %s795_s15 = smov 0  }
   0x5 LB: > { %s810_s16 = sadd.s32 4294967295, %s756_s15   ;;  %s543_s17 = sadd.s32 4294967294, %s756_s15   ;;  %s756_s15 = sphi %s795_s15, %s996_s15   ;;  %s752_s14 = sphi %s793_s14, %s995_s14   ;;  %s748_s13 = sphi %s791_s13, %s994_s13   ;;  %s744_s12 = sphi %s789_s12, %s993_s12  }
   0x6   : > { %s814_s18 = sadd.s32 1, %s756_s15   ;;  %s26_s19 = sadd.s32 1, %s752_s14 }
   0x7   : > { %s23_s20 = ssub.s32 %s756_s15, %s814_s18  ;;  %p33_p0 = scmp.ne.s32.totalorder %s752_s14, %s748_s13 }
   0x8   : > { %p24_p1 = scmp.eq.s32.totalorder %s23_s20, 0  ;;  %p34_p2 = scmp.eq.s32.totalorder %s756_s15, 0 }
   0x9   : > { %p39_p3 = scmp.ne.s32.totalorder %s748_s13, %s744_s12  ;;  %p40_p4 = scmp.eq.s32.totalorder %s810_s16, 0 }
   0xa   : > { %s826_s21 = scalar_select %p24_p1, %s752_s14, %s26_s19  }
   0xb   : > { %p828_p5 = por %p34_p2, %p33_p0  ;;  %p832_p6 = por %p40_p4, %p39_p3 }
   0xc   : > { %p105_p7 = scmp.eq.s32.totalorder %s810_s16, 1  ;;  %p111_p8 = scmp.eq.s32.totalorder %s543_s17, 1 }
   0xd   : > { %s983_s23 = scalar_select %p832_p6, 1, 0 }
   0xe   : > { %p619_p10 = scmp.lt.s32.totalorder %s756_s15, 2  ;;  %p839_p11 = por %p105_p7, %p33_p0 }
   0xf   : > { %p843_p12 = por %p111_p8, %p39_p3  ;;  %s137_s26 = sand.u32 1, %s752_s14  }
  0x10   : > { %s984_s24 = scalar_select %p839_p11, 1, 0 }
  0x11   : > { %s985_s25 = scalar_select %p843_p12, 1, 0 }
  0x12   : > { %s547_s27 = sshll.u32 %s756_s15, 7  ;;  %s546_s28 = sshll.u32 %s137_s26, 3 }
  0x13   : > { %s852_s4 = scalar_lea.hbm %s976_s0, %s547_s27  ;;  %s141_s5 = scalar_lea.vmem [#allocation2], %s546_s28 }
  0x14   : > { %s148_s6 = sshll.u32 %s141_s5, 4  ;;  %p856_p13 = pnand %p619_p10, %p828_p5  ;;  %s860_s6 = int_to_ptr.vmem [resolvable:$true] %s148_s6 }
  0x15   : > { %s138_s8 = scalar_lea.sflag [#allocation3], %s137_s26  ;;  %s664_s9 = scalar_lea.hbm %s852_s4, 128 }
  0x16   : > { %p665_p2 = scmp.ne.s32.totalorder %s852_s4, %s664_s9  ;;  %p666_p3 = pneg %p856_p13 }
  0x17   : > { %s669_s17 = scalar_lea.hbm %s976_s0, 256  ;;  %p670_p5 = scmp.lt.s32.totalorder %s852_s4, %s976_s0 }
  0x18   : > { %p667_p4 = pnand %p666_p3, %p665_p2  ;;  %p671_p8 = scmp.lt.s32.totalorder %s669_s17, %s664_s9 }
  0x1a   : > { %p668_p7 = pneg %p667_p4  ;;  %p672_p10 = por %p671_p8, %p670_p5 }
  0x1c   : > { %p673_p9 = pnand %p672_p10, %p668_p7 }
  0x1e   : > { %676 = shalt.err (!%p673_p9)
}
  0x1f   : > { %s677_s22 = scalar_lea.vmem %s860_s6, 128  ;;  %s758_s26 = smov [#allocation2]  }
  0x20   : > { %p678_p0 = scmp.ne.s32.totalorder %s860_s6, %s677_s22  ;;  %s682_s27 = sshll.u32 %s758_s26, 4  ;;  %s683_s27 = int_to_ptr.vmem [resolvable:$false] %s682_s27 }
  0x21   : > { %s684_s28 = scalar_lea.vmem %s683_s27, 256  ;;  %p685_p4 = scmp.lt.s32.totalorder %s860_s6, %s683_s27 }
  0x22   : > { %p680_p1 = pnand %p678_p0, %p666_p3  ;;  %p686_p12 = scmp.lt.s32.totalorder %s684_s28, %s677_s22 }
  0x24   : > { %p681_p2 = pneg %p680_p1  ;;  %p687_p11 = por %p686_p12, %p685_p4 }
  0x26   : > { %p688_p6 = pnand %p687_p11, %p681_p2 }
  0x28   : > { %691 = shalt.err (!%p688_p6)
}
  0x29   : > { %614 = dma.hbm_to_vmem [thread:$0]  (!%p856_p13), %s852_s4, 128, %s860_s6, %s138_s8  }
  0x2a   : > { %p987_p9 = scmp.lt.s32.totalorder %s756_s15, 3  ;;  %p988_p7 = scmp.ge.s32.totalorder %s756_s15, 1 }
  0x2c   : > { %p154_p0 = pnand %p988_p7, %p987_p9 }
  0x2d   : > { %s887_s29 = sand.u32 (!%p154_p0), 1, %s748_s13   ;;  %p989_p6 = scmp.ne.s32.totalorder (!%p154_p0), %s983_s23, 0 }
  0x2e   : > { %157 = sbr.rel (%p154_p0) target bundleno = 1010 (0x3f2), region = 32  ;;  %s549_s30 = sshll.u32 (!%p154_p0), %s887_s29, 3 }
  0x2f   : > { %s160_s5 = scalar_lea.sflag (!%p154_p0), [#allocation3], %s887_s29  ;;  %s163_s7 = scalar_lea.vmem (!%p154_p0), [#allocation2], %s549_s30 }
  0x33   : > { %735 = dma.done.wait (%p989_p6), %s160_s5, 128  }
  0x34   : > { %737 = vsyncadd (%p989_p6), %s160_s5, 4294967168  ;;  %v759_v0 = vmov 0.0   ;;  %vm760_vm0 = vmmov 0   ;;  %v761_v1 = vmov 0   ;;  %v186_v2 = vld [vmem:[%s163_s7] sm:$0xff]  ;;  %s762_s23 = smov 1   ;;  %v187_v4 = vlaneseq }
  0x35   : > { %580 = vmatprep.subr.mxu0 %v759_v0  ;;  %586 = vmatprep.mubr.msk.f32.mxu0 %vm760_vm0, %v759_v0  ;;  %v198_v3 = vld [vmem:[%s978_s2] sm:$0xff]  ;;  %s763_s8 = smov 2   ;;  %vm204_vm3 = vcmask 195584   ;;  %s764_s11 = smov 8   ;;  %v555_v13 = vld [vmem:[%s978_s2 + $0x8] sm:$0xff]  ;;  %v560_v21 = vld [vmem:[%s978_s2 + $0x10] sm:$0xff] }
  0x36   : > { %662 = vset.pattern.permute.xlu1 %v761_v1  ;;  %589 = vmatprep.subr.mxu1 %v759_v0  ;;  %v188_v5 = vand.u32 127, %v187_v4  ;;  %v197_v7 = vld [vmem:[%s977_s1] sm:$0xff]  ;;  %s765_s17 = smov 4   ;;  %v554_v15 = vld [vmem:[%s977_s1 + $0x8] sm:$0xff]  ;;  %s766_s27 = smov 18   ;;  %v559_v23 = vld [vmem:[%s977_s1 + $0x10] sm:$0xff] }
  0x37   : > { %595 = vmatprep.mubr.msk.f32.mxu1 %vm760_vm0, %v759_v0  ;;  %663 = vset.pattern.permute.xlu0 %v761_v1  ;;  %s767_s28 = smov 9   ;;  %s460_s19 = scalar_lea.sflag [#allocation4], %s887_s29 }
  0x38   : > { %193 = vrot.lane.b32.xlu0 %v186_v2, %s762_s23  ;;  %581 = vmatpush3.msra.mxu0 %v186_v2  ;;  %vm195_vm1 = vcmp.ge.s32.totalorder %v188_v5, 1  ;;  %vm191_vm2 = vcmp.ge.s32.totalorder %v188_v5, 2  ;;  %vm284_vm4 = vcmp.ge.s32.totalorder %v188_v5, 4  ;;  %vm280_vm5 = vcmp.ge.s32.totalorder %v188_v5, 8  ;;  %s565_s23 = sshll.u32 %s810_s16, 7  ;;  %p990_p12 = scmp.ne.s32.totalorder %s984_s24, 0 }
  0x39   : > { %582 = vmatprep.subr.mxu0 %v759_v0  ;;  %201 = vperm.xlu1 %662, %v198_v3   ;;  %vm374_vm6 = vcmp.ge.s32.totalorder %v188_v5, 9  ;;  %vm370_vm7 = vcmp.ge.s32.totalorder %v188_v5, 18  ;;  %s768_s16 = smov [#allocation5]  }
  0x3a   : > { %s696_s22 = sshll.u32 %s768_s16, 4  ;;  %s697_s22 = int_to_ptr.vmem [resolvable:$false] %s696_s22 }
  0x3c   : > { %189 = vrot.lane.b32.xlu0 %v186_v2, %s763_s8  ;;  %s185_s8 = scalar_lea.vmem [#allocation5], %s549_s30  ;;  %s698_s30 = scalar_lea.vmem %s697_s22, 256 }
  0x3d   : > { %s473_s9 = sshll.u32 %s185_s8, 4  ;;  %s474_s9 = int_to_ptr.vmem [resolvable:$true] %s473_s9 }
  0x3e   : > { %s692_s20 = scalar_lea.vmem %s474_s9, 128  ;;  %p699_p3 = scmp.lt.s32.totalorder %s474_s9, %s697_s22 }
  0x3f   : > { %p693_p11 = scmp.ne.s32.totalorder %s474_s9, %s692_s20  ;;  %p700_p5 = scmp.lt.s32.totalorder %s698_s30, %s692_s20 }
  0x41   : > { %p694_p13 = pnand %p693_p11, %p990_p12  ;;  %p701_p8 = por %p700_p5, %p699_p3 }
  0x43   : > { %p695_p1 = pneg %p694_p13 }
  0x45   : > { %p702_p10 = pnand %p701_p8, %p695_p1 }
  0xaa   : > { %v194_v6 = vpop.permute.xlu0 %193 }
  0xab   : > { %583 = vmatpush3.msk.msra.mxu0 %vm195_vm1, %v194_v6 }
  0xac   : > { %584 = vmatprep.subr.mxu0 %v759_v0 }
  0xae   : > { %v190_v8 = vpop.permute.xlu0 %189 }
  0xaf   : > { %585 = vmatpush3.msk.msra.mxu0 %vm191_vm2, %v190_v8 }
  0xb0   : > { %587 = vmatmul.mubr.msk.f32.vlgmr.msra.gmra.mxu0 %vm204_vm3, %v197_v7  ;;  %598 = vmatprep.subr.mxu0 %v759_v0 }
  0xb1   : > { %604 = vmatprep.mubr.msk.f32.mxu0 %vm760_vm0, %v759_v0 }
  0xb4   : > { %v202_v9 = vpop.permute.xlu1 %201 }
 0x170   : > { %v274_v10 = vpop.f32.mrf.mxu0 }
 0x171   : > { %v275_v11 = vadd.f32 %v274_v10, %v202_v9 }
 0x172   : > { %v588_v12 = vpop.f32.mrf.mxu0 }
 0x173   : > { %278 = vrot.lane.b32.xlu0 %v275_v11, %s764_s11  ;;  %282 = vrot.lane.b32.xlu1 %v275_v11, %s765_s17  ;;  %s939_s17 = scalar_lea.hbm %s979_s3, %s565_s23 }
 0x174   : > { %590 = vmatpush3.msra.mxu1 %v275_v11 }
 0x175   : > { %591 = vmatprep.subr.mxu1 %v759_v0 }
 0x177   : > { %292 = vperm.xlu1 %662, %v555_v13  }
 0x1e5   : > { %v283_v14 = vpop.permute.xlu1 %282  ;;  %v279_v16 = vpop.permute.xlu0 %278 }
 0x1e6   : > { %592 = vmatpush3.msk.msra.mxu1 %vm284_vm4, %v283_v14 }
 0x1e7   : > { %593 = vmatprep.subr.mxu1 %v759_v0 }
 0x1e8   : > { %594 = vmatpush3.msk.msra.mxu1 %vm280_vm5, %v279_v16 }
 0x1e9   : > { %596 = vmatmul.mubr.msk.f32.vlgmr.msra.gmra.mxu1 %vm204_vm3, %v554_v15 }
 0x1f2   : > { %v293_v17 = vpop.permute.xlu1 %292 }
 0x2a9   : > { %v364_v18 = vpop.f32.mrf.mxu1 }
 0x2aa   : > { %v365_v19 = vadd.f32 %v364_v18, %v293_v17 }
 0x2ab   : > { %v597_v20 = vpop.f32.mrf.mxu1 }
 0x2ac   : > { %368 = vrot.lane.b32.xlu1 %v365_v19, %s766_s27  ;;  %372 = vrot.lane.b32.xlu0 %v365_v19, %s767_s28 }
 0x2ad   : > { %599 = vmatpush3.msra.mxu0 %v365_v19 }
 0x2ae   : > { %600 = vmatprep.subr.mxu0 %v759_v0 }
 0x2b0   : > { %382 = vperm.xlu0 %663, %v560_v21  }
 0x31e   : > { %v373_v22 = vpop.permute.xlu0 %372  ;;  %v369_v24 = vpop.permute.xlu1 %368 }
 0x31f   : > { %601 = vmatpush3.msk.msra.mxu0 %vm374_vm6, %v373_v22 }
 0x320   : > { %602 = vmatprep.subr.mxu0 %v759_v0 }
 0x321   : > { %603 = vmatpush3.msk.msra.mxu0 %vm370_vm7, %v369_v24 }
 0x322   : > { %605 = vmatmul.mubr.msk.f32.vlgmr.msra.gmra.mxu0 %vm204_vm3, %v559_v23 }
 0x32b   : > { %v383_v25 = vpop.permute.xlu0 %382 }
 0x3e2   : > { %v454_v26 = vpop.f32.mrf.mxu0 }
 0x3e3   : > { %v455_v27 = vadd.f32 %v454_v26, %v383_v25 }
 0x3e4   : > { %v606_v28 = vpop.f32.mrf.mxu0 }
 0x3e5   : > { %458 = vst [vmem:[%s185_s8] sm:$0xff] %v455_v27 }
 0x3e6   : > { %705 = shalt.err (!%p702_p10)
}
 0x3e7   : > { %s706_s26 = scalar_lea.hbm %s939_s17, 128  ;;  %s710_s28 = scalar_lea.hbm %s979_s3, 256 }
 0x3e8   : > { %p707_p2 = scmp.ne.s32.totalorder %s939_s17, %s706_s26  ;;  %p711_p7 = scmp.lt.s32.totalorder %s939_s17, %s979_s3 }
 0x3e9   : > { %p712_p0 = scmp.lt.s32.totalorder %s710_s28, %s706_s26 }
 0x3ea   : > { %p708_p4 = pnand %p707_p2, %p990_p12 }
 0x3eb   : > { %p713_p6 = por %p712_p0, %p711_p7 }
 0x3ec   : > { %p709_p9 = pneg %p708_p4 }
 0x3ee   : > { %p714_p11 = pnand %p713_p6, %p709_p9 }
 0x3f0   : > { %717 = shalt.err (!%p714_p11)
}
 0x3f1   : > { %609 = dma.vmem_to_hbm [thread:$0]  (%p990_p12), %s474_s9, 128, %s939_s17, %s460_s19  }
 0x3f2 PF: > { %s485_s4 = sand.u32 1, %s744_s12   ;;  %p991_p13 = scmp.ne.s32.totalorder %s985_s25, 0 }
 0x3f3   : > { %p992_p1 = scmp.ge.s32.totalorder %s756_s15, 2  ;;  %s486_s6 = scalar_lea.sflag [#allocation4], %s485_s4 }
 0x3f5   : > { %p616_p3 = pnand %p992_p1, %p991_p13 }
 0x3f7   : > { %p617_p5 = pneg %p616_p3 }
 0x3f9   : > { %739 = dma.done.wait (%p617_p5), %s486_s6, 128  }
 0x3fa   : > { %741 = vsyncadd (%p617_p5), %s486_s6, 4294967168  ;;  %p16_p8 = scmp.ge.s32.totalorder %s814_s18, 4   ;;  %s993_s12 = smov %s748_s13 }
 0x3fb   : > { %s994_s13 = smov %s752_s14  ;;  %s995_s14 = smov %s826_s21 }
 0x3fc   : > { %s996_s15 = smov %s814_s18  ;;  %18 = sbr.rel (!%p16_p8) target bundleno = 5 (0x5), region = 81 }
 0x401   :  { %491 = vsyncpa [#allocation3], 1 }
 0x402   :  { %493 = vsyncpa [#allocation3 + $0x1], 1 }
 0x403   :  { %494 = vsyncpa [#allocation4], 1 }
 0x404   :  { %496 = vsyncpa [#allocation4 + $0x1], 1 }

</bundles_post_ra>
